<compile_context>
chip_gen: v7x
topology: tpu7x:2x2x1
jax: 0.10.0
libtpu: 0.0.40
codegen_flags: <defaults>
</compile_context>

<pallas_src>
import functools

import jax
import jax.numpy as jnp
from jax.experimental import pallas as pl
from jax.experimental.pallas import tpu as pltpu


# -----------------------------------------------------------------------------
# Kernel
# -----------------------------------------------------------------------------
def generator_kernel(x_ref, w1_ref, b1_ref, w2_ref, b2_ref, o_ref):
    # Noise arrives as raw f32; cast to bf16 in-kernel (VPU, hidden under MXU).
    x = x_ref[...].astype(jnp.bfloat16)
    # Layer 1: Linear (bf16 operands, f32 accumulate) + LeakyReLU(0.2).
    h = jnp.dot(x, w1_ref[...], preferred_element_type=jnp.float32) + b1_ref[...]
    h = jnp.where(h > 0, h, 0.2 * h)
    # Dropout(0.1): identity in eval mode.
    # TODO(synk): training-mode dropout needs pltpu.prng_seed / prng_random_bits.
    h = h.astype(jnp.bfloat16)
    # Layer 2: Linear output head (bf16 operands, f32 accumulate).
    out = jnp.dot(h, w2_ref[...], preferred_element_type=jnp.float32) + b2_ref[...]
    o_ref[...] = out.astype(o_ref.dtype)


# -----------------------------------------------------------------------------
# Wrapper
# -----------------------------------------------------------------------------
def _round_up(n, m):
    return ((n + m - 1) // m) * m


@functools.lru_cache(maxsize=1)
def _tensorcores_per_device():
    # Best-effort detection: v7x has 2 TensorCores per device, v5e/v6e have 1.
    try:
        kind = jax.devices()[0].device_kind.lower()
    except Exception:
        return 1
    return 2 if "v7" in kind else 1


def prepare_generator_params(w1, b1, w2, b2):
    """One-time parameter prep (hoisted out of the per-call path).

    Weights are stored [in, out] (transposed vs torch) in bf16 — native MXU
    dtype, halves weight DMA. Biases kept f32, shaped (1, F) for lane broadcast.
    """
    return (jnp.asarray(w1, jnp.bfloat16),
            jnp.asarray(b1, jnp.float32).reshape(1, -1),
            jnp.asarray(w2, jnp.bfloat16),
            jnp.asarray(b2, jnp.float32).reshape(1, -1))


def generator_forward(noise, params, *, out_dtype=jnp.float32, batch_tile=None):
    """noise: [B, K] f32; params: output of prepare_generator_params."""
    w1, b1, w2, b2 = params
    B, K = noise.shape
    H = w1.shape[1]
    N = w2.shape[1]

    out_itemsize = jax.dtypes.canonicalize_dtype(out_dtype).itemsize
    cost = pl.CostEstimate(
        flops=2 * B * (K * H + H * N),
        transcendentals=0,
        bytes_accessed=(noise.size * noise.dtype.itemsize
                        + w1.size * w1.dtype.itemsize
                        + w2.size * w2.dtype.itemsize
                        + b1.size * 4 + b2.size * 4
                        + B * N * out_itemsize),
    )

    n_tc = _tensorcores_per_device()
    # Single grid point up to ~1024 rows on single-TC chips (v5e/v6e: tiling a
    # serial loop only adds per-step overhead); grid from >256 on v7x so both
    # TensorCores stay busy.
    single_block_max = 256 if n_tc >= 2 else 1024

    if batch_tile is None and B <= single_block_max:
        # Small problem: one grid point, everything resident in VMEM (< ~3 MiB).
        return pl.pallas_call(
            generator_kernel,
            out_shape=jax.ShapeDtypeStruct((B, N), out_dtype),
            in_specs=[pl.BlockSpec(memory_space=pltpu.VMEM) for _ in range(5)],
            out_specs=pl.BlockSpec(memory_space=pltpu.VMEM),
            cost_estimate=cost,
        )(noise, w1, b1, w2, b2)

    # Gridded path: parallel batch axis (sharded across TensorCores on v7x,
    # compute/DMA pipelining on single-TC chips). cdiv grid handles any B;
    # the ragged last tile is read-padded / write-masked by Pallas.
    if batch_tile is None:
        if n_tc >= 2:
            # A few large steps — at least one per core, capped for VMEM.
            TB = min(1024, max(256, _round_up(pl.cdiv(B, n_tc), 256)))
        else:
            TB = 1024
    else:
        TB = batch_tile
    TB = min(_round_up(TB, 8), _round_up(B, 8))

    grid = (pl.cdiv(B, TB),)
    return pl.pallas_call(
        generator_kernel,
        out_shape=jax.ShapeDtypeStruct((B, N), out_dtype),
        grid=grid,
        in_specs=[
            pl.BlockSpec((TB, K), lambda i: (i, 0)),
            # Weights / biases: same block every step -> stay VMEM-resident
            # (Pallas only re-DMAs when the block index changes).
            pl.BlockSpec((K, H), lambda i: (0, 0)),
            pl.BlockSpec((1, H), lambda i: (0, 0)),
            pl.BlockSpec((H, N), lambda i: (0, 0)),
            pl.BlockSpec((1, N), lambda i: (0, 0)),
        ],
        out_specs=pl.BlockSpec((TB, N), lambda i: (i, 0)),
        compiler_params=pltpu.CompilerParams(
            dimension_semantics=("parallel",)),
        cost_estimate=cost,
    )(noise, w1, b1, w2, b2)


# -----------------------------------------------------------------------------
# References & init
# -----------------------------------------------------------------------------
def reference_forward_mixed(noise, params):
    # Mirrors the kernel's dtype pipeline (bf16 operands, f32 accumulate).
    w1, b1, w2, b2 = params
    h = jnp.dot(noise.astype(jnp.bfloat16), w1,
                preferred_element_type=jnp.float32) + b1
    h = jnp.where(h > 0, h, 0.2 * h)
    return jnp.dot(h.astype(jnp.bfloat16), w2,
                   preferred_element_type=jnp.float32) + b2


def reference_forward_f32(noise, w1, b1, w2, b2):
    # True f32 math (what the PyTorch module computes in eval mode).
    h = noise @ w1 + b1
    h = jnp.where(h > 0, h, 0.2 * h)
    return h @ w2 + b2


def init_linear_params(key, in_features, out_features):
    # Deterministic init mirroring torch.nn.Linear default:
    # U(-1/sqrt(fan_in), 1/sqrt(fan_in)) for both weight and bias.
    kw, kb = jax.random.split(key)
    bound = 1.0 / (in_features ** 0.5)
    # Stored as [in, out] (transposed vs torch's [out, in]) for x @ W.
    w = jax.random.uniform(kw, (in_features, out_features), jnp.float32, -bound, bound)
    b = jax.random.uniform(kb, (out_features,), jnp.float32, -bound, bound)
    return w, b


if __name__ == "__main__":
    # Module defaults: noise_size=100, hidden_sizes=[512], output_size=512.
    noise_size = 100
    hidden_size = 512
    output_size = 512

    key = jax.random.PRNGKey(0)
    k_noise, k_l1, k_l2, k_big = jax.random.split(key, 4)

    w1, b1 = init_linear_params(k_l1, noise_size, hidden_size)
    w2, b2 = init_linear_params(k_l2, hidden_size, output_size)
    params = prepare_generator_params(w1, b1, w2, b2)  # one-time prep

    # --- Small batch: single grid point, everything VMEM-resident ---
    batch = 8
    noise = jax.random.normal(k_noise, (batch, noise_size), jnp.float32)
    out = jax.block_until_ready(generator_forward(noise, params))
    ref_mixed = reference_forward_mixed(noise, params)
    ref_f32 = reference_forward_f32(noise, w1, b1, w2, b2)
    assert out.shape == (batch, output_size)
    assert jnp.allclose(out, ref_mixed, atol=2e-2, rtol=2e-2), \
        f"small-batch mismatch (mixed ref): max err {jnp.max(jnp.abs(out - ref_mixed))}"
    assert jnp.allclose(out, ref_f32, atol=1e-1, rtol=1e-1), \
        f"small-batch mismatch (f32 ref): max err {jnp.max(jnp.abs(out - ref_f32))}"

    # --- Gridded batch path (batch_tile forced so it is exercised on any chip),
    #     including a ragged last block (300 % 256 != 0, masked write). ---
    big_batch = 300
    noise_big = jax.random.normal(k_big, (big_batch, noise_size), jnp.float32)
    out_big = jax.block_until_ready(
        generator_forward(noise_big, params, batch_tile=256))
    ref_big = reference_forward_mixed(noise_big, params)
    assert out_big.shape == (big_batch, output_size)
    assert jnp.allclose(out_big, ref_big, atol=2e-2, rtol=2e-2), \
        f"gridded-batch mismatch: max err {jnp.max(jnp.abs(out_big - ref_big))}"

    # --- Optional bf16 output (halves the dominant output HBM stream) ---
    out_bf16 = jax.block_until_ready(
        generator_forward(noise_big, params, out_dtype=jnp.bfloat16, batch_tile=256))
    assert jnp.allclose(out_bf16.astype(jnp.float32), ref_big, atol=5e-2, rtol=5e-2), \
        "bf16-output path mismatch"

    print("KERNEL_OK")
</pallas_src>

<mosaic_0001>
module attributes {stable_mosaic.version = 11 : i64} {
  func.func @generator_kernel(%arg0: memref<8x100xf32, #tpu.memory_space<vmem>>, %arg1: memref<100x512xbf16, #tpu.memory_space<vmem>>, %arg2: memref<1x512xf32, #tpu.memory_space<vmem>>, %arg3: memref<512x512xbf16, #tpu.memory_space<vmem>>, %arg4: memref<1x512xf32, #tpu.memory_space<vmem>>, %arg5: memref<8x512xf32, #tpu.memory_space<vmem>>) attributes {dimension_semantics = [], scalar_prefetch = 0 : i64, scratch_operands = 0 : i64, tpu.core_type = #tpu.core_type<tc>} {
    %c0 = arith.constant 0 : index
    %c0_0 = arith.constant 0 : index
    %0 = vector.load %arg0[%c0, %c0_0] : memref<8x100xf32, #tpu.memory_space<vmem>>, vector<8x100xf32>
    %1 = arith.truncf %0 : vector<8x100xf32> to vector<8x100xbf16>
    %c0_1 = arith.constant 0 : index
    %c0_2 = arith.constant 0 : index
    %2 = vector.load %arg1[%c0_1, %c0_2] : memref<100x512xbf16, #tpu.memory_space<vmem>>, vector<100x512xbf16>
    %cst = arith.constant dense<0.000000e+00> : vector<8x512xf32>
    %3 = tpu.matmul %1, %2, %cst {dimension_numbers = #tpu.dot_dimension_numbers<[1], [0], [0], [1], [0, 0, 1, 1], [], []>} : vector<8x100xbf16>, vector<100x512xbf16>, vector<8x512xf32> -> vector<8x512xf32>
    %c0_3 = arith.constant 0 : index
    %c0_4 = arith.constant 0 : index
    %4 = vector.load %arg2[%c0_3, %c0_4] : memref<1x512xf32, #tpu.memory_space<vmem>>, vector<1x512xf32>
    %5 = vector.broadcast %4 : vector<1x512xf32> to vector<8x512xf32>
    %6 = arith.addf %3, %5 : vector<8x512xf32>
    %cst_5 = arith.constant 0.000000e+00 : f32
    %7 = vector.broadcast %cst_5 : f32 to vector<8x512xf32>
    %8 = arith.cmpf ogt, %6, %7 : vector<8x512xf32>
    %cst_6 = arith.constant 2.000000e-01 : f32
    %9 = vector.broadcast %cst_6 : f32 to vector<8x512xf32>
    %10 = arith.mulf %9, %6 : vector<8x512xf32>
    %11 = arith.select %8, %6, %10 : vector<8x512xi1>, vector<8x512xf32>
    %12 = arith.truncf %11 : vector<8x512xf32> to vector<8x512xbf16>
    %c0_7 = arith.constant 0 : index
    %c0_8 = arith.constant 0 : index
    %13 = vector.load %arg3[%c0_7, %c0_8] : memref<512x512xbf16, #tpu.memory_space<vmem>>, vector<512x512xbf16>
    %cst_9 = arith.constant dense<0.000000e+00> : vector<8x512xf32>
    %14 = tpu.matmul %12, %13, %cst_9 {dimension_numbers = #tpu.dot_dimension_numbers<[1], [0], [0], [1], [0, 0, 1, 1], [], []>} : vector<8x512xbf16>, vector<512x512xbf16>, vector<8x512xf32> -> vector<8x512xf32>
    %c0_10 = arith.constant 0 : index
    %c0_11 = arith.constant 0 : index
    %15 = vector.load %arg4[%c0_10, %c0_11] : memref<1x512xf32, #tpu.memory_space<vmem>>, vector<1x512xf32>
    %16 = vector.broadcast %15 : vector<1x512xf32> to vector<8x512xf32>
    %17 = arith.addf %14, %16 : vector<8x512xf32>
    %c0_12 = arith.constant 0 : index
    %c0_13 = arith.constant 0 : index
    %18 = vector.load %arg5[%c0_12, %c0_13] : memref<8x512xf32, #tpu.memory_space<vmem>>, vector<8x512xf32>
    tpu.vector_store %arg5[%c0_12, %c0_13], %17 {strides = array<i32>} : memref<8x512xf32, #tpu.memory_space<vmem>>, vector<8x512xf32>,
    return
  }
}

</mosaic_0001>

<bundles_post_ra>
// kernel: tpu_custom_call.1
= control target key start
LH: loop header
LB: loop body
LE: loop exit
PB: predicated region body
PF: predicated region fallthrough
CT: control target
= control target key end

     0   :  { %10 = vsyncpa [#allocation3], 0  ;;  %s1965_s0 = inlined_call_operand.hbm [shape: f32[8,100], index: 0, kind: input, shape index: {}]   ;;  %s1966_s1 = inlined_call_operand.hbm [shape: bf16[100,512], index: 1, kind: input, shape index: {}]   ;;  %s1967_s2 = inlined_call_operand.vmem [shape: f32[1,512], index: 2, kind: input, shape index: {}]   ;;  %s1968_s3 = inlined_call_operand.hbm [shape: bf16[512,512], index: 3, kind: input, shape index: {}]   ;;  %s1969_s4 = inlined_call_operand.vmem [shape: f32[1,512], index: 4, kind: input, shape index: {}]   ;;  %s1970_s5 = inlined_call_operand.hbm [shape: f32[8,512], index: 5, kind: output, shape index: {}]  }
   0x1   :  { %11 = vsyncpa [#allocation6], 0 }
   0x2   :  { %12 = vsyncpa [#allocation4], 0  ;;  %s1835_s18 = smov [#allocation5]   ;;  %s1741_s22 = scalar_lea.hbm %s1966_s1, 3328 }
   0x3   :  { %s28_s19 = sshll.u32 %s1835_s18, 4  ;;  %p1742_p0 = scmp.ne.s32.totalorder %s1966_s1, %s1741_s22  ;;  %s29_s19 = int_to_ptr.vmem [resolvable:$true] %s28_s19 }
   0x4   :  { %p1745_p1 = scmp.lt.u32.totalorder %s1741_s22, %s1966_s1 }
   0x6   :  { %p1747_p2 = pnand %p1745_p1, %p1742_p0 }
   0x8   :  { %1750 = shalt.err (!%p1747_p2)
}
   0x9   :  { %s1751_s27 = scalar_lea.vmem %s29_s19, 3328  ;;  %p1756_p4 = scmp.lt.s32.totalorder %s29_s19, %s29_s19 }
   0xa   :  { %p1752_p3 = scmp.ne.s32.totalorder %s29_s19, %s1751_s27  ;;  %p1757_p5 = scmp.lt.s32.totalorder %s1751_s27, %s1751_s27 }
   0xc   :  { %p1758_p6 = por %p1757_p5, %p1756_p4 }
   0xe   :  { %p1759_p7 = pnand %p1758_p6, %p1752_p3 }
  0x10   :  { %1762 = shalt.err (!%p1759_p7)
}
  0x11   :  { %s1836_s28 = smov 256   ;;  %s1837_s29 = smov 16  }
  0x12   :  { %34 = dma.hbm_to_vmem [thread:$0]  %s1966_s1, 3328, %s29_s19, [#allocation6], %s1836_s28, %s1836_s28, %s1837_s29  }
  0x13   :  { %s1838_s7 = smov [#allocation2]   ;;  %s1839_s9 = smov [#allocation7]  }
  0x14   :  { %s19_s8 = sshll.u32 %s1838_s7, 4  ;;  %s42_s10 = sshll.u32 %s1839_s9, 4  ;;  %s20_s8 = int_to_ptr.vmem [resolvable:$true] %s19_s8  ;;  %s43_s10 = int_to_ptr.vmem [resolvable:$true] %s42_s10 }
  0x15   :  { %s1763_s13 = scalar_lea.hbm %s1965_s0, 128 }
  0x16   :  { %p1764_p8 = scmp.ne.s32.totalorder %s1965_s0, %s1763_s13  ;;  %p1767_p9 = scmp.lt.u32.totalorder %s1763_s13, %s1965_s0 }
  0x18   :  { %p1769_p10 = pnand %p1767_p9, %p1764_p8 }
  0x1a   :  { %1772 = shalt.err (!%p1769_p10)
}
  0x1b   :  { %s1773_s1 = scalar_lea.vmem %s20_s8, 128  ;;  %p1778_p12 = scmp.lt.s32.totalorder %s20_s8, %s20_s8 }
  0x1c   :  { %p1774_p11 = scmp.ne.s32.totalorder %s20_s8, %s1773_s1  ;;  %p1779_p13 = scmp.lt.s32.totalorder %s1773_s1, %s1773_s1 }
  0x1e   :  { %p1780_p0 = por %p1779_p13, %p1778_p12 }
  0x20   :  { %p1781_p1 = pnand %p1780_p0, %p1774_p11 }
  0x22   :  { %1784 = shalt.err (!%p1781_p1)
}
  0x23   :  { %22 = dma.hbm_to_vmem [thread:$0]  %s1965_s0, 128, %s20_s8, [#allocation3]  }
  0x24   :  { %s1785_s22 = scalar_lea.hbm %s1968_s3, 16384 }
  0x25   :  { %p1786_p2 = scmp.ne.s32.totalorder %s1968_s3, %s1785_s22  ;;  %p1789_p3 = scmp.lt.u32.totalorder %s1785_s22, %s1968_s3 }
  0x27   :  { %p1791_p4 = pnand %p1789_p3, %p1786_p2 }
  0x29   :  { %1794 = shalt.err (!%p1791_p4)
}
  0x2a   :  { %s1795_s27 = scalar_lea.vmem %s43_s10, 16384  ;;  %p1800_p6 = scmp.lt.s32.totalorder %s43_s10, %s43_s10 }
  0x2b   :  { %p1796_p5 = scmp.ne.s32.totalorder %s43_s10, %s1795_s27  ;;  %p1801_p7 = scmp.lt.s32.totalorder %s1795_s27, %s1795_s27 }
  0x2d   :  { %p1802_p8 = por %p1801_p7, %p1800_p6 }
  0x2f   :  { %p1803_p9 = pnand %p1802_p8, %p1796_p5 }
  0x31   :  { %1806 = shalt.err (!%p1803_p9)
}
  0x32   :  { %48 = dma.hbm_to_vmem [thread:$0]  %s1968_s3, 16384, %s43_s10, [#allocation6], %s1836_s28, %s1836_s28, %s1837_s29  }
  0x33   :  { %1829 = dma.done.wait [#allocation3], 128  }
  0x34   :  { %1830 = vsyncadd [#allocation3], 4294967168 }
  0x35   :  { %1831 = dma.done.wait [#allocation6], 19712  }
  0x36   :  { %1832 = vsyncadd [#allocation6], 4294947584  ;;  %v1840_v0 = vmov 0   ;;  %v1509_v1 = vld [vmem:[#allocation5 + $0x4] ss:$16 sps:$4 sm:$0xff]   ;;  %vm245_vm0 = vcmask 1041408  }
  0x37   :  { %290 = vmatprep.mubr.bf16.mxu0 %v1840_v0  ;;  %331 = vmatprep.mubr.bf16.mxu1 %v1840_v0  ;;  %v1511_v2 = vld [vmem:[#allocation5] ss:$16 sps:$4 sm:$0xff]   ;;  %v1512_v3 = vld [vmem:[#allocation5 + $0x24] ss:$16 sps:$4 sm:$0xff]   ;;  %v1529_v8 = vld [vmem:[#allocation5 + $0xc] ss:$16 sps:$4 sm:$0xff]  }
  0x38   :  { %258 = vmatprep.subr.bf16.mxu0 %v1509_v1  ;;  %v1514_v4 = vld [vmem:[#allocation5 + $0x20] ss:$16 sps:$4 sm:$0xff]   ;;  %v1515_v5 = vld [vmem:[#allocation5 + $0x44] ss:$16 sps:$4 sm:$0xff]   ;;  %v1531_v9 = vld [vmem:[#allocation5 + $0x8] ss:$16 sps:$4 sm:$0xff]   ;;  %299 = vmatprep.subr.bf16.mxu1 %v1529_v8 }
  0x39   :  { %259 = vmatpush1.bf16.msra.mxu0 %v1511_v2  ;;  %v1517_v6 = vld [vmem:[#allocation5 + $0x40] ss:$16 sps:$4 sm:$0xff]   ;;  %v1518_v7 = vld [vmem:[#allocation5 + $0x64] ss:$16 sps:$4 sm:$0xff]   ;;  %v1532_v10 = vld [vmem:[#allocation5 + $0x2c] ss:$16 sps:$4 sm:$0xff]   ;;  %300 = vmatpush1.bf16.msra.mxu1 %v1531_v9 }
  0x3a   :  { %260 = vmatprep.subr.bf16.mxu0 %v1512_v3  ;;  %v1520_v11 = vld [vmem:[#allocation5 + $0x60] ss:$16 sps:$4 sm:$0xff]   ;;  %v1521_v12 = vld [vmem:[#allocation5 + $0x84] ss:$16 sps:$4 sm:$0xff]   ;;  %v1534_v13 = vld [vmem:[#allocation5 + $0x28] ss:$16 sps:$4 sm:$0xff]   ;;  %301 = vmatprep.subr.bf16.mxu1 %v1532_v10 }
  0x3b   :  { %v1535_v14 = vld [vmem:[#allocation5 + $0x4c] ss:$16 sps:$4 sm:$0xff]   ;;  %v1523_v15 = vld [vmem:[#allocation5 + $0x80] ss:$16 sps:$4 sm:$0xff]   ;;  %v1524_v16 = vld [vmem:[#allocation5 + $0xa4] ss:$16 sps:$4 sm:$0xff]  }
  0x3c   :  { %v87_v17 = vld [vmem:[#allocation5 + $0xc0] sm:$0x33]  ;;  %v1537_v18 = vld [vmem:[#allocation5 + $0x48] ss:$16 sps:$4 sm:$0xff]   ;;  %v1538_v19 = vld [vmem:[#allocation5 + $0x6c] ss:$16 sps:$4 sm:$0xff]  }
  0x3d   :  { %261 = vmatpush1.bf16.msra.mxu0 %v1514_v4  ;;  %302 = vmatpush1.bf16.msra.mxu1 %v1534_v13  ;;  %v1526_v20 = vld [vmem:[#allocation5 + $0xa0] ss:$16 sps:$4 sm:$0xff]   ;;  %v1355_v21 = vcombine.high %v87_v17, %v87_v17  ;;  %v1354_v22 = vcombine.low %v87_v17, %v87_v17  ;;  %v1540_v23 = vld [vmem:[#allocation5 + $0x68] ss:$16 sps:$4 sm:$0xff]   ;;  %v1541_v24 = vld [vmem:[#allocation5 + $0x8c] ss:$16 sps:$4 sm:$0xff]  }
  0x3e   :  { %262 = vmatprep.subr.bf16.mxu0 %v1515_v5  ;;  %303 = vmatprep.subr.bf16.mxu1 %v1535_v14  ;;  %v61_v25 = vld [vmem:[#allocation2] sm:$0xff]  ;;  %v1551_v28 = vld [vmem:[#allocation7 + $0x4] ss:$16 sps:$4 sm:$0xff]   ;;  %v88_v31 = vld [vmem:[#allocation5 + $0xc8] sm:$0x33]  ;;  %vm241_vm1 = vcmask 818176  }
  0x3f   :  { %v247_v26 = vsel %vm245_vm0, %v1354_v22, 0  ;;  %v1543_v27 = vld [vmem:[#allocation5 + $0x88] ss:$16 sps:$4 sm:$0xff]   ;;  %v1544_v29 = vld [vmem:[#allocation5 + $0xac] ss:$16 sps:$4 sm:$0xff]   ;;  %v62_v30 = vpack.c.bf16 %v61_v25, %v61_v25  ;;  %v1357_v35 = vcombine.high %v88_v31, %v88_v31  ;;  %v1356_v36 = vcombine.low %v88_v31, %v88_v31  ;;  %s1841_s6 = smov [#allocation8]  }
  0x40   :  { %v1549_v32 = vld [vmem:[#allocation7] ss:$16 sps:$4 sm:$0xff]   ;;  %v1546_v33 = vld [vmem:[#allocation5 + $0xa8] ss:$16 sps:$4 sm:$0xff]   ;;  %v1557_v34 = vld [vmem:[#allocation7 + $0x24] ss:$16 sps:$4 sm:$0xff]  }
  0x41   :  { %263 = vmatpush1.bf16.msra.mxu0 %v1517_v6  ;;  %304 = vmatpush1.bf16.msra.mxu1 %v1537_v18  ;;  %v1555_v37 = vld [vmem:[#allocation7 + $0x20] ss:$16 sps:$4 sm:$0xff]   ;;  %v1563_v38 = vld [vmem:[#allocation7 + $0x44] ss:$16 sps:$4 sm:$0xff]   ;;  %v253_v39 = vsel %vm245_vm0, %v1356_v36, 0  ;;  %s1320_s7 = sshll.u32 %s1841_s6, 4  ;;  %s1321_s7 = int_to_ptr.vmem [resolvable:$true] %s1320_s7 }
  0x42   :  { %264 = vmatprep.subr.bf16.mxu0 %v1518_v7  ;;  %305 = vmatprep.subr.bf16.mxu1 %v1538_v19  ;;  %v1554_v40 = vld [vmem:[#allocation7 + $0xc] ss:$16 sps:$4 sm:$0xff]   ;;  %v1561_v41 = vld [vmem:[#allocation7 + $0x40] ss:$16 sps:$4 sm:$0xff]   ;;  %v1552_v42 = vld [vmem:[#allocation7 + $0x8] ss:$16 sps:$4 sm:$0xff]   ;;  %p1812_p11 = scmp.lt.s32.totalorder %s1321_s7, %s1321_s7 }
  0x43   :  { %v1569_v43 = vld [vmem:[#allocation7 + $0x64] ss:$16 sps:$4 sm:$0xff]   ;;  %v1560_v44 = vld [vmem:[#allocation7 + $0x2c] ss:$16 sps:$4 sm:$0xff]   ;;  %v1567_v45 = vld [vmem:[#allocation7 + $0x60] ss:$16 sps:$4 sm:$0xff]  }
  0x44   :  { %v1558_v46 = vld [vmem:[#allocation7 + $0x28] ss:$16 sps:$4 sm:$0xff]   ;;  %v1575_v47 = vld [vmem:[#allocation7 + $0x84] ss:$16 sps:$4 sm:$0xff]   ;;  %v1566_v48 = vld [vmem:[#allocation7 + $0x4c] ss:$16 sps:$4 sm:$0xff]  }
  0x45   :  { %265 = vmatpush1.bf16.msra.mxu0 %v1520_v11  ;;  %306 = vmatpush1.bf16.msra.mxu1 %v1540_v23  ;;  %v1573_v49 = vld [vmem:[#allocation7 + $0x80] ss:$16 sps:$4 sm:$0xff]   ;;  %v1564_v50 = vld [vmem:[#allocation7 + $0x48] ss:$16 sps:$4 sm:$0xff]   ;;  %v1581_v51 = vld [vmem:[#allocation7 + $0xa4] ss:$16 sps:$4 sm:$0xff]  }
  0x46   :  { %266 = vmatprep.subr.bf16.mxu0 %v1521_v12  ;;  %307 = vmatprep.subr.bf16.mxu1 %v1541_v24  ;;  %v1572_v52 = vld [vmem:[#allocation7 + $0x6c] ss:$16 sps:$4 sm:$0xff]   ;;  %v1579_v53 = vld [vmem:[#allocation7 + $0xa0] ss:$16 sps:$4 sm:$0xff]   ;;  %v1570_v54 = vld [vmem:[#allocation7 + $0x68] ss:$16 sps:$4 sm:$0xff]  }
  0x47   :  { %v1587_v55 = vld [vmem:[#allocation7 + $0xc4] ss:$16 sps:$4 sm:$0xff]   ;;  %v1578_v56 = vld [vmem:[#allocation7 + $0x8c] ss:$16 sps:$4 sm:$0xff]   ;;  %v1585_v57 = vld [vmem:[#allocation7 + $0xc0] ss:$16 sps:$4 sm:$0xff]  }
  0x48   :  { %v1576_v58 = vld [vmem:[#allocation7 + $0x88] ss:$16 sps:$4 sm:$0xff]   ;;  %v1593_v59 = vld [vmem:[#allocation7 + $0xe4] ss:$16 sps:$4 sm:$0xff]   ;;  %v1584_v60 = vld [vmem:[#allocation7 + $0xac] ss:$16 sps:$4 sm:$0xff]  }
  0x49   :  { %267 = vmatpush1.bf16.msra.mxu0 %v1523_v15  ;;  %308 = vmatpush1.bf16.msra.mxu1 %v1543_v27  ;;  %v1582_v61 = vld [vmem:[#allocation7 + $0xa8] ss:$16 sps:$4 sm:$0xff]   ;;  %v1591_v62 = vld [vmem:[#allocation7 + $0xe0] ss:$16 sps:$4 sm:$0xff]   ;;  %v1599_v63 = vld [vmem:[#allocation7 + $0x104] ss:$16 sps:$4 sm:$0xff]  }
  0x4a   :  { %268 = vmatprep.subr.bf16.mxu0 %v1524_v16  ;;  %309 = vmatprep.subr.bf16.mxu1 %v1544_v29  ;;  %v1590_v0 = vld [vmem:[#allocation7 + $0xcc] ss:$16 sps:$4 sm:$0xff]   ;;  %v1597_v1 = vld [vmem:[#allocation7 + $0x100] ss:$16 sps:$4 sm:$0xff]   ;;  %v1588_v2 = vld [vmem:[#allocation7 + $0xc8] ss:$16 sps:$4 sm:$0xff]  }
  0x4b   :  { %v1605_v3 = vld [vmem:[#allocation7 + $0x124] ss:$16 sps:$4 sm:$0xff]   ;;  %v1596_v4 = vld [vmem:[#allocation7 + $0xec] ss:$16 sps:$4 sm:$0xff]   ;;  %v1603_v5 = vld [vmem:[#allocation7 + $0x120] ss:$16 sps:$4 sm:$0xff]  }
  0x4c   :  { %v1594_v6 = vld [vmem:[#allocation7 + $0xe8] ss:$16 sps:$4 sm:$0xff]   ;;  %v1611_v7 = vld [vmem:[#allocation7 + $0x144] ss:$16 sps:$4 sm:$0xff]   ;;  %v1602_v8 = vld [vmem:[#allocation7 + $0x10c] ss:$16 sps:$4 sm:$0xff]  }
  0x4d   :  { %269 = vmatpush1.bf16.msra.mxu0 %v1526_v20  ;;  %310 = vmatpush1.bf16.msra.mxu1 %v1546_v33  ;;  %v1609_v9 = vld [vmem:[#allocation7 + $0x140] ss:$16 sps:$4 sm:$0xff]   ;;  %v1600_v10 = vld [vmem:[#allocation7 + $0x108] ss:$16 sps:$4 sm:$0xff]   ;;  %v1617_v11 = vld [vmem:[#allocation7 + $0x164] ss:$16 sps:$4 sm:$0xff]  }
  0x4e   :  { %1358 = vmatprep.subr.msk.bf16.mxu0 %vm245_vm0, %v1355_v21  ;;  %1360 = vmatprep.subr.msk.bf16.mxu1 %vm245_vm0, %v1357_v35  ;;  %v1608_v12 = vld [vmem:[#allocation7 + $0x12c] ss:$16 sps:$4 sm:$0xff]   ;;  %v1615_v13 = vld [vmem:[#allocation7 + $0x160] ss:$16 sps:$4 sm:$0xff]   ;;  %v1606_v14 = vld [vmem:[#allocation7 + $0x128] ss:$16 sps:$4 sm:$0xff]  }
  0x4f   :  { %v1623_v15 = vld [vmem:[#allocation7 + $0x184] ss:$16 sps:$4 sm:$0xff]   ;;  %v1614_v16 = vld [vmem:[#allocation7 + $0x14c] ss:$16 sps:$4 sm:$0xff]   ;;  %v1621_v17 = vld [vmem:[#allocation7 + $0x180] ss:$16 sps:$4 sm:$0xff]  }
  0x50   :  { %v1612_v18 = vld [vmem:[#allocation7 + $0x148] ss:$16 sps:$4 sm:$0xff]   ;;  %v1629_v19 = vld [vmem:[#allocation7 + $0x1a4] ss:$16 sps:$4 sm:$0xff]   ;;  %v1620_v20 = vld [vmem:[#allocation7 + $0x16c] ss:$16 sps:$4 sm:$0xff]  }
  0x51   :  { %271 = vmatpush1.bf16.msra.mxu0 %v247_v26  ;;  %312 = vmatpush1.bf16.msra.mxu1 %v253_v39  ;;  %v1627_v21 = vld [vmem:[#allocation7 + $0x1a0] ss:$16 sps:$4 sm:$0xff]   ;;  %v1618_v22 = vld [vmem:[#allocation7 + $0x168] ss:$16 sps:$4 sm:$0xff]   ;;  %v1626_v23 = vld [vmem:[#allocation7 + $0x18c] ss:$16 sps:$4 sm:$0xff]  }
  0x52   :  { %1146 = vmatprep.subr.bf16.mxu0 %v1551_v28  ;;  %1228 = vmatprep.subr.bf16.mxu1 %v1554_v40  ;;  %v1624_v24 = vld [vmem:[#allocation7 + $0x188] ss:$16 sps:$4 sm:$0xff]   ;;  %v1632_v25 = vld [vmem:[#allocation7 + $0x1ac] ss:$16 sps:$4 sm:$0xff]   ;;  %v1635_v27 = vld [vmem:[#allocation7 + $0x1c4] ss:$16 sps:$4 sm:$0xff]  }
  0x53   :  { %v1630_v26 = vld [vmem:[#allocation7 + $0x1a8] ss:$16 sps:$4 sm:$0xff]   ;;  %v1638_v28 = vld [vmem:[#allocation7 + $0x1cc] ss:$16 sps:$4 sm:$0xff]   ;;  %v1633_v29 = vld [vmem:[#allocation7 + $0x1c0] ss:$16 sps:$4 sm:$0xff]  }
  0x54   :  { %1359 = vmatmul.mubr.msk.bf16.vlgmr.msra.gmra.mrb[0].mxu0 %vm241_vm1, %v62_v30  ;;  %1361 = vmatmul.mubr.msk.bf16.vlgmr.msra.gmra.mrb[0].mxu1 %vm241_vm1, %v62_v30  ;;  %v1636_v30 = vld [vmem:[#allocation7 + $0x1c8] ss:$16 sps:$4 sm:$0xff]   ;;  %v1641_v31 = vld [vmem:[#allocation7 + $0x1e4] ss:$16 sps:$4 sm:$0xff]   ;;  %v1639_v33 = vld [vmem:[#allocation7 + $0x1e0] ss:$16 sps:$4 sm:$0xff]  }
  0x55   :  { %1147 = vmatpush1.bf16.msra.mxu0 %v1549_v32  ;;  %1229 = vmatpush1.bf16.msra.mxu1 %v1552_v42  ;;  %v1644_v32 = vld [vmem:[#allocation7 + $0x1ec] ss:$16 sps:$4 sm:$0xff]   ;;  %v1647_v35 = vld [vmem:[#allocation7 + $0x204] ss:$16 sps:$4 sm:$0xff]   ;;  %v1926_v40 = vld [vmem:[%s1967_s2] sm:$0xf] }
  0x56   :  { %1148 = vmatprep.subr.bf16.mxu0 %v1557_v34  ;;  %1230 = vmatprep.subr.bf16.mxu1 %v1560_v44  ;;  %v1642_v34 = vld [vmem:[#allocation7 + $0x1e8] ss:$16 sps:$4 sm:$0xff]   ;;  %v1650_v36 = vld [vmem:[#allocation7 + $0x20c] ss:$16 sps:$4 sm:$0xff]  }
  0x59   :  { %1149 = vmatpush1.bf16.msra.mxu0 %v1555_v37  ;;  %1231 = vmatpush1.bf16.msra.mxu1 %v1558_v46  ;;  %v91_v37 = vlaneseq }
  0x5a   :  { %1150 = vmatprep.subr.bf16.mxu0 %v1563_v38  ;;  %1232 = vmatprep.subr.bf16.mxu1 %v1566_v48 }
  0x5b   :  { %v1920_v38 = vshrl.u32 %v91_v37, 7  ;;  %v1704_v37 = vld [vmem:[#allocation7 + $0x32c] ss:$16 sps:$4 sm:$0xff]  }
  0x5d   :  { %1151 = vmatpush1.bf16.msra.mxu0 %v1561_v41  ;;  %1233 = vmatpush1.bf16.msra.mxu1 %v1564_v50  ;;  %v93_v39 = vsub.s32 0, %v1920_v38  ;;  %v97_v41 = vsub.s32 1, %v1920_v38 }
  0x5e   :  { %1152 = vmatprep.subr.bf16.mxu0 %v1569_v43  ;;  %1234 = vmatprep.subr.bf16.mxu1 %v1572_v52 }
  0x5f   :  { %v94_v42 = vrot.slane %v1926_v40, %v93_v39  ;;  %v98_v43 = vrot.slane %v1926_v40, %v97_v41 }
  0x61   :  { %1153 = vmatpush1.bf16.msra.mxu0 %v1567_v45  ;;  %1235 = vmatpush1.bf16.msra.mxu1 %v1570_v54 }
  0x62   :  { %1154 = vmatprep.subr.bf16.mxu0 %v1575_v47  ;;  %1236 = vmatprep.subr.bf16.mxu1 %v1578_v56  ;;  %v1645_v56 = vld [vmem:[#allocation7 + $0x200] ss:$16 sps:$4 sm:$0xff]  }
  0x65   :  { %1155 = vmatpush1.bf16.msra.mxu0 %v1573_v49  ;;  %1237 = vmatpush1.bf16.msra.mxu1 %v1576_v58 }
  0x66   :  { %1156 = vmatprep.subr.bf16.mxu0 %v1581_v51  ;;  %1238 = vmatprep.subr.bf16.mxu1 %v1584_v60  ;;  %v105_v51 = vsub.s32 3, %v1920_v38  ;;  %v1653_v60 = vld [vmem:[#allocation7 + $0x224] ss:$16 sps:$4 sm:$0xff]  }
  0x68   :  { %v106_v58 = vrot.slane %v1926_v40, %v105_v51 }
  0x69   :  { %1157 = vmatpush1.bf16.msra.mxu0 %v1579_v53  ;;  %1239 = vmatpush1.bf16.msra.mxu1 %v1582_v61  ;;  %v1656_v61 = vld [vmem:[#allocation7 + $0x22c] ss:$16 sps:$4 sm:$0xff]  }
  0x6a   :  { %1158 = vmatprep.subr.bf16.mxu0 %v1587_v55  ;;  %1240 = vmatprep.subr.bf16.mxu1 %v1590_v0  ;;  %v1651_v0 = vld [vmem:[#allocation7 + $0x220] ss:$16 sps:$4 sm:$0xff]  }
  0x6d   :  { %1159 = vmatpush1.bf16.msra.mxu0 %v1585_v57  ;;  %1241 = vmatpush1.bf16.msra.mxu1 %v1588_v2  ;;  %v1648_v57 = vld [vmem:[#allocation7 + $0x208] ss:$16 sps:$4 sm:$0xff]  }
  0x6e   :  { %1160 = vmatprep.subr.bf16.mxu0 %v1593_v59  ;;  %1242 = vmatprep.subr.bf16.mxu1 %v1596_v4  ;;  %v1659_v4 = vld [vmem:[#allocation7 + $0x244] ss:$16 sps:$4 sm:$0xff]  }
  0x71   :  { %1161 = vmatpush1.bf16.msra.mxu0 %v1591_v62  ;;  %1243 = vmatpush1.bf16.msra.mxu1 %v1594_v6 }
  0x72   :  { %1162 = vmatprep.subr.bf16.mxu0 %v1599_v63  ;;  %1244 = vmatprep.subr.bf16.mxu1 %v1602_v8  ;;  %v1657_v8 = vld [vmem:[#allocation7 + $0x240] ss:$16 sps:$4 sm:$0xff]  }
  0x75   :  { %1163 = vmatpush1.bf16.msra.mxu0 %v1597_v1  ;;  %1245 = vmatpush1.bf16.msra.mxu1 %v1600_v10  ;;  %v1654_v1 = vld [vmem:[#allocation7 + $0x228] ss:$16 sps:$4 sm:$0xff]  }
  0x76   :  { %1164 = vmatprep.subr.bf16.mxu0 %v1605_v3  ;;  %1246 = vmatprep.subr.bf16.mxu1 %v1608_v12  ;;  %v1668_v12 = vld [vmem:[#allocation7 + $0x26c] ss:$16 sps:$4 sm:$0xff]  }
  0x79   :  { %1165 = vmatpush1.bf16.msra.mxu0 %v1603_v5  ;;  %1247 = vmatpush1.bf16.msra.mxu1 %v1606_v14  ;;  %v1662_v5 = vld [vmem:[#allocation7 + $0x24c] ss:$16 sps:$4 sm:$0xff]   ;;  %v1663_v14 = vld [vmem:[#allocation7 + $0x260] ss:$16 sps:$4 sm:$0xff]  }
  0x7a   :  { %1166 = vmatprep.subr.bf16.mxu0 %v1611_v7  ;;  %1248 = vmatprep.subr.bf16.mxu1 %v1614_v16  ;;  %v1671_v16 = vld [vmem:[#allocation7 + $0x284] ss:$16 sps:$4 sm:$0xff]  }
  0x7d   :  { %1167 = vmatpush1.bf16.msra.mxu0 %v1609_v9  ;;  %1249 = vmatpush1.bf16.msra.mxu1 %v1612_v18  ;;  %v1660_v9 = vld [vmem:[#allocation7 + $0x248] ss:$16 sps:$4 sm:$0xff]   ;;  %v1669_v18 = vld [vmem:[#allocation7 + $0x280] ss:$16 sps:$4 sm:$0xff]  }
  0x7e   :  { %1168 = vmatprep.subr.bf16.mxu0 %v1617_v11  ;;  %1250 = vmatprep.subr.bf16.mxu1 %v1620_v20  ;;  %v1665_v11 = vld [vmem:[#allocation7 + $0x264] ss:$16 sps:$4 sm:$0xff]  }
  0x7f   :  { %v1677_v20 = vld [vmem:[#allocation7 + $0x2a4] ss:$16 sps:$4 sm:$0xff]  }
  0x81   :  { %1169 = vmatpush1.bf16.msra.mxu0 %v1615_v13  ;;  %1251 = vmatpush1.bf16.msra.mxu1 %v1618_v22  ;;  %v1675_v22 = vld [vmem:[#allocation7 + $0x2a0] ss:$16 sps:$4 sm:$0xff]  }
  0x82   :  { %1170 = vmatprep.subr.bf16.mxu0 %v1623_v15  ;;  %1252 = vmatprep.subr.bf16.mxu1 %v1626_v23  ;;  %v1666_v15 = vld [vmem:[#allocation7 + $0x268] ss:$16 sps:$4 sm:$0xff]  }
  0x83   :  { %v1678_v23 = vld [vmem:[#allocation7 + $0x2a8] ss:$16 sps:$4 sm:$0xff]  }
  0x85   :  { %1171 = vmatpush1.bf16.msra.mxu0 %v1621_v17  ;;  %1253 = vmatpush1.bf16.msra.mxu1 %v1624_v24  ;;  %v1674_v17 = vld [vmem:[#allocation7 + $0x28c] ss:$16 sps:$4 sm:$0xff]   ;;  %v1683_v24 = vld [vmem:[#allocation7 + $0x2c4] ss:$16 sps:$4 sm:$0xff]  }
  0x86   :  { %1172 = vmatprep.subr.bf16.mxu0 %v1629_v19  ;;  %1254 = vmatprep.subr.bf16.mxu1 %v1632_v25  ;;  %v1672_v19 = vld [vmem:[#allocation7 + $0x288] ss:$16 sps:$4 sm:$0xff]   ;;  %v1686_v25 = vld [vmem:[#allocation7 + $0x2cc] ss:$16 sps:$4 sm:$0xff]  }
  0x89   :  { %1173 = vmatpush1.bf16.msra.mxu0 %v1627_v21  ;;  %1255 = vmatpush1.bf16.msra.mxu1 %v1630_v26  ;;  %v1680_v21 = vld [vmem:[#allocation7 + $0x2ac] ss:$16 sps:$4 sm:$0xff]   ;;  %v1681_v26 = vld [vmem:[#allocation7 + $0x2c0] ss:$16 sps:$4 sm:$0xff]  }
  0x8a   :  { %1174 = vmatprep.subr.bf16.mxu0 %v1635_v27  ;;  %1256 = vmatprep.subr.bf16.mxu1 %v1638_v28  ;;  %v1684_v27 = vld [vmem:[#allocation7 + $0x2c8] ss:$16 sps:$4 sm:$0xff]   ;;  %v1689_v28 = vld [vmem:[#allocation7 + $0x2e4] ss:$16 sps:$4 sm:$0xff]  }
  0x8d   :  { %1175 = vmatpush1.bf16.msra.mxu0 %v1633_v29  ;;  %1257 = vmatpush1.bf16.msra.mxu1 %v1636_v30  ;;  %v1692_v29 = vld [vmem:[#allocation7 + $0x2ec] ss:$16 sps:$4 sm:$0xff]   ;;  %v1687_v30 = vld [vmem:[#allocation7 + $0x2e0] ss:$16 sps:$4 sm:$0xff]  }
  0x8e   :  { %1176 = vmatprep.subr.bf16.mxu0 %v1641_v31  ;;  %1258 = vmatprep.subr.bf16.mxu1 %v1644_v32  ;;  %v1690_v31 = vld [vmem:[#allocation7 + $0x2e8] ss:$16 sps:$4 sm:$0xff]   ;;  %v1695_v32 = vld [vmem:[#allocation7 + $0x304] ss:$16 sps:$4 sm:$0xff]  }
  0x91   :  { %1177 = vmatpush1.bf16.msra.mxu0 %v1639_v33  ;;  %1259 = vmatpush1.bf16.msra.mxu1 %v1642_v34  ;;  %v1698_v33 = vld [vmem:[#allocation7 + $0x30c] ss:$16 sps:$4 sm:$0xff]   ;;  %v1693_v34 = vld [vmem:[#allocation7 + $0x300] ss:$16 sps:$4 sm:$0xff]  }
  0x92   :  { %1187 = vmatprep.subr.bf16.mxu0 %v1647_v35  ;;  %1269 = vmatprep.subr.bf16.mxu1 %v1650_v36  ;;  %v1696_v35 = vld [vmem:[#allocation7 + $0x308] ss:$16 sps:$4 sm:$0xff]   ;;  %v1701_v36 = vld [vmem:[#allocation7 + $0x324] ss:$16 sps:$4 sm:$0xff]  }
 0x127   :  { %v292_v44 = vpop.f32.mrb[0].mxu0  ;;  %v1939_v62 = vpop.f32.mrb[0].mxu1 }
 0x128   :  { %v293_v45 = vadd.f32 %v292_v44, %v94_v42  ;;  %v294_v46 = vpop.f32.mrb[1].mxu0  ;;  %v335_v63 = vpop.f32.mrb[1].mxu1  ;;  %v1699_v42 = vld [vmem:[#allocation7 + $0x320] ss:$16 sps:$4 sm:$0xff]   ;;  %v1707_v44 = vld [vmem:[#allocation7 + $0x344] ss:$16 sps:$4 sm:$0xff]  }
 0x129   :  { %v295_v47 = vadd.f32 %v294_v46, %v98_v43  ;;  %v296_v48 = vpop.f32.mrb[2].mxu0  ;;  %v336_v2 = vadd.f32 %v335_v63, %v106_v58  ;;  %v337_v3 = vpop.f32.mrb[2].mxu1  ;;  %v1702_v43 = vld [vmem:[#allocation7 + $0x328] ss:$16 sps:$4 sm:$0xff]   ;;  %v1705_v46 = vld [vmem:[#allocation7 + $0x340] ss:$16 sps:$4 sm:$0xff]  }
 0x12a   :  { %vm340_vm2 = vcmp.gt.f32.partialorder %v293_v45, 0.0  ;;  %v344_v49 = vmul.f32 0.2, %v293_v45  ;;  %v297_v50 = vpop.f32.mrb[3].mxu0  ;;  %v338_v6 = vpop.f32.mrb[3].mxu1 }
 0x12b   :  { %vm341_vm3 = vcmp.gt.f32.partialorder %v295_v47, 0.0  ;;  %v345_v52 = vmul.f32 0.2, %v295_v47  ;;  %vm343_vm4 = vcmp.gt.f32.partialorder %v336_v2, 0.0  ;;  %v347_v7 = vmul.f32 0.2, %v336_v2 }
 0x12c   :  { %v348_v53 = vsel %vm340_vm2, %v293_v45, %v344_v49  ;;  %v1710_v45 = vld [vmem:[#allocation7 + $0x34c] ss:$16 sps:$4 sm:$0xff]   ;;  %v1713_v48 = vld [vmem:[#allocation7 + $0x364] ss:$16 sps:$4 sm:$0xff]   ;;  %v1711_v50 = vld [vmem:[#allocation7 + $0x360] ss:$16 sps:$4 sm:$0xff]  }
 0x12d   :  { %v349_v54 = vsel %vm341_vm3, %v295_v47, %v345_v52  ;;  %v352_v59 = vpack.c.bf16 %v348_v53, %v348_v53  ;;  %v351_v10 = vsel %vm343_vm4, %v336_v2, %v347_v7  ;;  %v1708_v47 = vld [vmem:[#allocation7 + $0x348] ss:$16 sps:$4 sm:$0xff]   ;;  %v1716_v49 = vld [vmem:[#allocation7 + $0x36c] ss:$16 sps:$4 sm:$0xff]   ;;  %v1719_v53 = vld [vmem:[#allocation7 + $0x384] ss:$16 sps:$4 sm:$0xff]  }
 0x12e   :  { %v353_v55 = vpack.c.bf16 %v349_v54, %v349_v54  ;;  %v355_v13 = vpack.c.bf16 %v351_v10, %v351_v10  ;;  %v1714_v52 = vld [vmem:[#allocation7 + $0x368] ss:$16 sps:$4 sm:$0xff]   ;;  %v1722_v54 = vld [vmem:[#allocation7 + $0x38c] ss:$16 sps:$4 sm:$0xff]   ;;  %v1725_v58 = vld [vmem:[#allocation7 + $0x3a4] ss:$16 sps:$4 sm:$0xff]  }
 0x12f   :  { %v1726_v63 = vld [vmem:[#allocation7 + $0x3a8] ss:$16 sps:$4 sm:$0xff]   ;;  %v1729_v3 = vld [vmem:[#allocation7 + $0x3c0] ss:$16 sps:$4 sm:$0xff]   ;;  %v1740_v6 = vld [vmem:[#allocation7 + $0x3ec] ss:$16 sps:$4 sm:$0xff]  }
 0x130   :  { %1178 = vmatprep.mubr.bf16.mxu0 %v353_v55  ;;  %1260 = vmatprep.mubr.bf16.mxu1 %v353_v55  ;;  %v101_v55 = vsub.s32 2, %v1920_v38  ;;  %v484_v10 = vld [vmem:[%s1969_s4] sm:$0xf]  ;;  %s1807_s4 = scalar_lea.vmem %s1321_s7, 512 }
 0x131   :  { %1179 = vmatmul.mubr.bf16.vlgmr.msra.gmra.mrb[4].mxu0 %v352_v59  ;;  %1261 = vmatmul.mubr.bf16.vlgmr.msra.gmra.mrb[4].mxu1 %v352_v59  ;;  %v1728_v59 = vld [vmem:[#allocation7 + $0x3ac] ss:$16 sps:$4 sm:$0xff]   ;;  %p1808_p10 = scmp.ne.s32.totalorder %s1321_s7, %s1807_s4  ;;  %p1813_p12 = scmp.lt.s32.totalorder %s1807_s4, %s1807_s4 }
 0x132   :  { %1188 = vmatpush1.bf16.msra.mxu0 %v1645_v56  ;;  %1270 = vmatpush1.bf16.msra.mxu1 %v1648_v57  ;;  %v1717_v56 = vld [vmem:[#allocation7 + $0x380] ss:$16 sps:$4 sm:$0xff]   ;;  %v1720_v57 = vld [vmem:[#allocation7 + $0x388] ss:$16 sps:$4 sm:$0xff]  }
 0x133   :  { %1189 = vmatprep.subr.bf16.mxu0 %v1653_v60  ;;  %1271 = vmatprep.subr.bf16.mxu1 %v1656_v61  ;;  %v102_v60 = vrot.slane %v1926_v40, %v101_v55  ;;  %v1723_v61 = vld [vmem:[#allocation7 + $0x3a0] ss:$16 sps:$4 sm:$0xff]   ;;  %p1814_p13 = por %p1813_p12, %p1812_p11 }
 0x134   :  { %1219 = vmatprep.mubr.bf16.mxu0 %v355_v13  ;;  %1301 = vmatprep.mubr.bf16.mxu1 %v355_v13  ;;  %v1735_v40 = vld [vmem:[#allocation7 + $0x3e0] ss:$16 sps:$4 sm:$0xff]   ;;  %v493_v13 = vrot.slane %v484_v10, %v97_v41 }
 0x135   :  { %v334_v2 = vadd.f32 %v1939_v62, %v102_v60  ;;  %p1815_p0 = pnand %p1814_p13, %p1808_p10 }
 0x136   :  { %1190 = vmatpush1.bf16.msra.mxu0 %v1651_v0  ;;  %1272 = vmatpush1.bf16.msra.mxu1 %v1654_v1  ;;  %v1731_v0 = vld [vmem:[#allocation7 + $0x3c4] ss:$16 sps:$4 sm:$0xff]   ;;  %v1734_v1 = vld [vmem:[#allocation7 + $0x3cc] ss:$16 sps:$4 sm:$0xff]  }
 0x137   :  { %1191 = vmatprep.subr.bf16.mxu0 %v1659_v4  ;;  %1273 = vmatprep.subr.bf16.mxu1 %v1662_v5  ;;  %v1732_v4 = vld [vmem:[#allocation7 + $0x3c8] ss:$16 sps:$4 sm:$0xff]   ;;  %v1737_v5 = vld [vmem:[#allocation7 + $0x3e4] ss:$16 sps:$4 sm:$0xff]   ;;  %v346_v7 = vmul.f32 0.2, %v334_v2 }
 0x138   :  { %vm342_vm5 = vcmp.gt.f32.partialorder %v334_v2, 0.0 }
 0x13a   :  { %1192 = vmatpush1.bf16.msra.mxu0 %v1657_v8  ;;  %1274 = vmatpush1.bf16.msra.mxu1 %v1660_v9  ;;  %v1738_v8 = vld [vmem:[#allocation7 + $0x3e8] ss:$16 sps:$4 sm:$0xff]   ;;  %v350_v9 = vsel %vm342_vm5, %v334_v2, %v346_v7 }
 0x13b   :  { %1193 = vmatprep.subr.bf16.mxu0 %v1665_v11  ;;  %1275 = vmatprep.subr.bf16.mxu1 %v1668_v12  ;;  %v354_v62 = vpack.c.bf16 %v350_v9, %v350_v9  ;;  %v489_v11 = vrot.slane %v484_v10, %v93_v39  ;;  %v497_v12 = vrot.slane %v484_v10, %v101_v55 }
 0x13e   :  { %1194 = vmatpush1.bf16.msra.mxu0 %v1663_v14  ;;  %1276 = vmatpush1.bf16.msra.mxu1 %v1666_v15  ;;  %v501_v14 = vrot.slane %v484_v10, %v105_v51 }
 0x13f   :  { %1195 = vmatprep.subr.bf16.mxu0 %v1671_v16  ;;  %1277 = vmatprep.subr.bf16.mxu1 %v1674_v17 }
 0x142   :  { %1196 = vmatpush1.bf16.msra.mxu0 %v1669_v18  ;;  %1278 = vmatpush1.bf16.msra.mxu1 %v1672_v19 }
 0x143   :  { %1197 = vmatprep.subr.bf16.mxu0 %v1677_v20  ;;  %1279 = vmatprep.subr.bf16.mxu1 %v1680_v21 }
 0x146   :  { %1198 = vmatpush1.bf16.msra.mxu0 %v1675_v22  ;;  %1280 = vmatpush1.bf16.msra.mxu1 %v1678_v23 }
 0x147   :  { %1199 = vmatprep.subr.bf16.mxu0 %v1683_v24  ;;  %1281 = vmatprep.subr.bf16.mxu1 %v1686_v25 }
 0x14a   :  { %1200 = vmatpush1.bf16.msra.mxu0 %v1681_v26  ;;  %1282 = vmatpush1.bf16.msra.mxu1 %v1684_v27 }
 0x14b   :  { %1201 = vmatprep.subr.bf16.mxu0 %v1689_v28  ;;  %1283 = vmatprep.subr.bf16.mxu1 %v1692_v29 }
 0x14e   :  { %1202 = vmatpush1.bf16.msra.mxu0 %v1687_v30  ;;  %1284 = vmatpush1.bf16.msra.mxu1 %v1690_v31 }
 0x14f   :  { %1203 = vmatprep.subr.bf16.mxu0 %v1695_v32  ;;  %1285 = vmatprep.subr.bf16.mxu1 %v1698_v33 }
 0x152   :  { %1204 = vmatpush1.bf16.msra.mxu0 %v1693_v34  ;;  %1286 = vmatpush1.bf16.msra.mxu1 %v1696_v35 }
 0x153   :  { %1205 = vmatprep.subr.bf16.mxu0 %v1701_v36  ;;  %1287 = vmatprep.subr.bf16.mxu1 %v1704_v37 }
 0x156   :  { %1206 = vmatpush1.bf16.msra.mxu0 %v1699_v42  ;;  %1288 = vmatpush1.bf16.msra.mxu1 %v1702_v43 }
 0x157   :  { %1207 = vmatprep.subr.bf16.mxu0 %v1707_v44  ;;  %1289 = vmatprep.subr.bf16.mxu1 %v1710_v45 }
 0x15a   :  { %1208 = vmatpush1.bf16.msra.mxu0 %v1705_v46  ;;  %1290 = vmatpush1.bf16.msra.mxu1 %v1708_v47 }
 0x15b   :  { %1209 = vmatprep.subr.bf16.mxu0 %v1713_v48  ;;  %1291 = vmatprep.subr.bf16.mxu1 %v1716_v49 }
 0x15e   :  { %1210 = vmatpush1.bf16.msra.mxu0 %v1711_v50  ;;  %1292 = vmatpush1.bf16.msra.mxu1 %v1714_v52 }
 0x15f   :  { %1211 = vmatprep.subr.bf16.mxu0 %v1719_v53  ;;  %1293 = vmatprep.subr.bf16.mxu1 %v1722_v54 }
 0x162   :  { %1212 = vmatpush1.bf16.msra.mxu0 %v1717_v56  ;;  %1294 = vmatpush1.bf16.msra.mxu1 %v1720_v57 }
 0x163   :  { %1213 = vmatprep.subr.bf16.mxu0 %v1725_v58  ;;  %1295 = vmatprep.subr.bf16.mxu1 %v1728_v59 }
 0x166   :  { %1214 = vmatpush1.bf16.msra.mxu0 %v1723_v61  ;;  %1296 = vmatpush1.bf16.msra.mxu1 %v1726_v63 }
 0x167   :  { %1215 = vmatprep.subr.bf16.mxu0 %v1731_v0  ;;  %1297 = vmatprep.subr.bf16.mxu1 %v1734_v1 }
 0x16a   :  { %1216 = vmatpush1.bf16.msra.mxu0 %v1729_v3  ;;  %1298 = vmatpush1.bf16.msra.mxu1 %v1732_v4 }
 0x16b   :  { %1217 = vmatprep.subr.bf16.mxu0 %v1737_v5  ;;  %1299 = vmatprep.subr.bf16.mxu1 %v1740_v6 }
 0x16e   :  { %1218 = vmatpush1.bf16.msra.mxu0 %v1735_v40  ;;  %1300 = vmatpush1.bf16.msra.mxu1 %v1738_v8 }
 0x171   :  { %1220 = vmatmul.mubr.bf16.vlgmr.msra.gmra.mrb[4].mxu0 %v354_v62  ;;  %1302 = vmatmul.mubr.bf16.vlgmr.msra.gmra.mrb[4].mxu1 %v354_v62 }
 0x244   :  { %v1221_v15 = vpop.f32.mrb[4].mxu0  ;;  %v1303_v16 = vpop.f32.mrb[4].mxu1 }
 0x245   :  { %v1490_v17 = vadd.f32 %v1221_v15, %v489_v11  ;;  %v1492_v18 = vadd.f32 %v1303_v16, %v497_v12  ;;  %v1223_v19 = vpop.f32.mrb[5].mxu0  ;;  %v1305_v20 = vpop.f32.mrb[5].mxu1 }
 0x246   :  { %v1491_v21 = vadd.f32 %v1223_v19, %v493_v13  ;;  %v1493_v22 = vadd.f32 %v1305_v20, %v501_v14  ;;  %v1225_v23 = vpop.f32.mrb[6].mxu0  ;;  %v1307_v24 = vpop.f32.mrb[6].mxu1 }
 0x247   :  { %1310 = vst [vmem:[#allocation8] sm:$0xff] %v1490_v17  ;;  %1312 = vst [vmem:[#allocation8 + $0x10] sm:$0xff] %v1492_v18  ;;  %v1226_v39 = vpop.f32.mrb[7].mxu0  ;;  %v1308_v41 = vpop.f32.mrb[7].mxu1 }
 0x248   :  { %1311 = vst [vmem:[#allocation8 + $0x8] sm:$0xff] %v1491_v21  ;;  %1313 = vst [vmem:[#allocation8 + $0x18] sm:$0xff] %v1493_v22 }
 0x249   :  { %1818 = shalt.err (!%p1815_p0)
}
 0x24a   :  { %s1819_s10 = scalar_lea.hbm %s1970_s5, 512 }
 0x24b   :  { %p1820_p1 = scmp.ne.s32.totalorder %s1970_s5, %s1819_s10  ;;  %p1823_p2 = scmp.lt.u32.totalorder %s1819_s10, %s1970_s5 }
 0x24d   :  { %p1825_p3 = pnand %p1823_p2, %p1820_p1 }
 0x24f   :  { %1828 = shalt.err (!%p1825_p3)
}
 0x250   :  { %1323 = dma.vmem_to_hbm [thread:$0]  %s1321_s7, 512, %s1970_s5, [#allocation4]  }
 0x251   :  { %1833 = dma.done.wait [#allocation4], 512  }
 0x252   :  { %1834 = vsyncadd [#allocation4], 4294966784 }
 0x253   :  { %1327 = vsyncpa [#allocation3], 1 }
 0x254   :  { %1328 = vsyncpa [#allocation6], 1 }
 0x255   :  { %1329 = vsyncpa [#allocation4], 1 }

</bundles_post_ra>
